<compile_context>
chip_gen: v7x
topology: tpu7x:2x2x1
jax: 0.10.0
libtpu: 0.0.40
codegen_flags: <defaults>
</compile_context>

<pallas_src>
import functools

import jax
import jax.numpy as jnp
from jax import lax
from jax.experimental import pallas as pl
from jax.experimental.pallas import tpu as pltpu

LANES = 128
SUBLANES = 8                      # rows of the f32 lane-parallel accumulator
_SMALL_INPUT_BYTES = 512 * 1024   # below this, the XLA fusion beats kernel launch


def _round_up(x, m):
    return ((x + m - 1) // m) * m


def _cdiv(a, b):
    return -(-a // b)


def _device_config():
    """Returns (num_splits, per-input-buffer tile byte budget) for the local TPU."""
    kind = ""
    try:
        kind = jax.devices()[0].device_kind.lower()
    except Exception:
        pass
    if "v7" in kind or "tpu7" in kind or "7x" in kind:
        # v7x: 2 TensorCores/chip, 32 MiB default scoped VMEM (64 MiB physical).
        return 2, 4 * 1024 * 1024
    if "v6" in kind:
        # v6e: 1 TC, 32 MiB default scoped VMEM.
        return 1, 4 * 1024 * 1024
    # v5e / unknown: 1 TC, 16 MiB default scoped VMEM -> stay conservative.
    return 1, 2 * 1024 * 1024


def _l1_kernel(x_ref, y_ref, out_ref, *, rows_valid, row_tile, blocks_per_split,
               num_blocks, needs_mask, compute_dtype):
    j = pl.program_id(0)   # core split ("parallel"; both TCs on v7x)
    k = pl.program_id(1)   # streaming block (reduction axis, "arbitrary", last)

    @pl.when(k == 0)
    def _():
        out_ref[...] = jnp.zeros_like(out_ref)

    # abs-diff in the (possibly narrow) input dtype; widen to f32 for the sum.
    absdiff = jnp.abs(
        x_ref[...].astype(compute_dtype) - y_ref[...].astype(compute_dtype)
    ).astype(jnp.float32)

    def accumulate(ad):
        # Lane-parallel partial sums into the resident (1, 8, 128) accumulator.
        partial = ad.reshape(row_tile // SUBLANES, SUBLANES, LANES).sum(axis=0)
        out_ref[...] += partial[None]

    if needs_mask:
        # Only the globally-last (ragged) block pays for the row mask; rows past
        # the valid extent hold stale/uninitialized VMEM and are zeroed here.
        block_idx = j * blocks_per_split + k
        is_last = block_idx == num_blocks - 1

        @pl.when(is_last)
        def _():
            row_start = block_idx * row_tile
            row_ids = row_start + lax.broadcasted_iota(jnp.int32, absdiff.shape, 0)
            accumulate(jnp.where(row_ids < rows_valid, absdiff, 0.0))

        @pl.when(jnp.logical_not(is_last))
        def _():
            accumulate(absdiff)
    else:
        accumulate(absdiff)


def loss_cont(imgs, gts, *, min_pallas_bytes=_SMALL_INPUT_BYTES, row_tile_override=None):
    """Mean absolute error == torch.nn.L1Loss()(imgs, gts) (default 'mean')."""
    assert imgs.shape == gts.shape, "L1Loss here assumes matching shapes"
    n_elems = imgs.size
    if n_elems == 0:
        return jnp.float32(jnp.nan)   # mean over empty (matches torch)

    x_dt, y_dt = jnp.dtype(imgs.dtype), jnp.dtype(gts.dtype)
    narrow_ok = (jnp.dtype(jnp.bfloat16), jnp.dtype(jnp.float16), jnp.dtype(jnp.float32))
    compute_dtype = x_dt if (x_dt == y_dt and x_dt in narrow_ok) else jnp.dtype(jnp.float32)

    total_bytes = n_elems * (x_dt.itemsize + y_dt.itemsize)
    if total_bytes < min_pallas_bytes:
        # Tiny inputs: pallas_call launch/grid overhead dominates; XLA fusion wins.
        d = imgs.astype(compute_dtype) - gts.astype(compute_dtype)
        return jnp.mean(jnp.abs(d).astype(jnp.float32))

    x = imgs.reshape(-1)
    y = gts.reshape(-1)

    # Sublane-packing granularity of the narrowest input dtype (8/16/32 rows).
    sub = max(SUBLANES, 32 // min(x_dt.itemsize, y_dt.itemsize))
    align = sub * LANES

    # Kernel handles the lane-aligned prefix; the (< sub*128 element) tail is
    # summed by a trivial XLA fusion.  No jnp.pad -> the common aligned case is
    # completely copy-free in the wrapper.
    n_main = (n_elems // align) * align
    tail_sum = jnp.float32(0.0)
    if n_main < n_elems:
        xt = lax.slice(x, (n_main,), (n_elems,)).astype(compute_dtype)
        yt = lax.slice(y, (n_main,), (n_elems,)).astype(compute_dtype)
        tail_sum = jnp.sum(jnp.abs(xt - yt).astype(jnp.float32))
    if n_main == 0:
        return tail_sum / jnp.float32(n_elems)

    x_main = x if n_main == n_elems else lax.slice(x, (0,), (n_main,))
    y_main = y if n_main == n_elems else lax.slice(y, (0,), (n_main,))

    rows = n_main // LANES                  # multiple of `sub`
    x2 = x_main.reshape(rows, LANES)
    y2 = y_main.reshape(rows, LANES)

    num_splits, tile_budget = _device_config()

    if row_tile_override is not None:
        row_tile = min(_round_up(int(row_tile_override), sub), rows)
    else:
        max_itemsize = max(x_dt.itemsize, y_dt.itemsize)
        max_row_tile = max(sub, (tile_budget // (LANES * max_itemsize)) // sub * sub)
        row_tile = min(max_row_tile, rows)
    num_blocks = _cdiv(rows, row_tile)

    if num_splits > 1:
        if num_blocks < num_splits:
            num_splits = 1
        elif num_blocks % num_splits != 0:
            # Round the *block count* (not rows) so the split is exact: no
            # clamped duplicate DMAs, both TensorCores get equal work.
            nb = _round_up(num_blocks, num_splits)
            rt = _round_up(_cdiv(rows, nb), sub)
            if (nb - 1) * rt < rows:
                num_blocks, row_tile = nb, rt
            else:
                num_splits = 1      # pathological split: run single-core serial
    blocks_per_split = num_blocks // num_splits
    needs_mask = (num_blocks * row_tile != rows)

    kernel = functools.partial(
        _l1_kernel,
        rows_valid=rows,
        row_tile=row_tile,
        blocks_per_split=blocks_per_split,
        num_blocks=num_blocks,
        needs_mask=needs_mask,
        compute_dtype=compute_dtype,
    )

    def in_map(j, k):
        return (j * blocks_per_split + k, 0)

    partials = pl.pallas_call(
        kernel,
        out_shape=jax.ShapeDtypeStruct((num_splits, SUBLANES, LANES), jnp.float32),
        grid_spec=pltpu.PrefetchScalarGridSpec(
            num_scalar_prefetch=0,
            grid=(num_splits, blocks_per_split),
            in_specs=[
                pl.BlockSpec((row_tile, LANES), in_map),
                pl.BlockSpec((row_tile, LANES), in_map),
            ],
            out_specs=pl.BlockSpec((1, SUBLANES, LANES), lambda j, k: (j, 0, 0)),
        ),
        # TODO(synk): on v7x, verify "parallel" core-shards the leading axis;
        # if it lowers as a sequential loop, switch it to pltpu.CORE_PARALLEL.
        compiler_params=pltpu.CompilerParams(
            dimension_semantics=("parallel", "arbitrary"),
        ),
    )(x2, y2)

    # Final cross-lane/cross-core reduction + divide-by-N in the wrapper.
    return (jnp.sum(partials) + tail_sum) / jnp.float32(n_elems)


if __name__ == "__main__":
    key = jax.random.PRNGKey(0)
    k1, k2 = jax.random.split(key)
    # NCHW, small shapes: batch=2, channels=4, spatial=16x16
    imgs = jax.random.normal(k1, (2, 4, 16, 16), dtype=jnp.float32)
    gts = jax.random.normal(k2, (2, 4, 16, 16), dtype=jnp.float32)

    # Force the Pallas path (default would take the tiny-input XLA fallback).
    loss = loss_cont(imgs, gts, min_pallas_bytes=0)
    jax.block_until_ready(loss)
    ref = jnp.mean(jnp.abs(imgs - gts))
    assert jnp.allclose(loss, ref, rtol=1e-5, atol=1e-6), (loss, ref)

    # Non-lane-aligned size: exercises the copy-free prefix + jnp tail path.
    k3, k4 = jax.random.split(k1)
    a = jax.random.normal(k3, (3, 5, 17, 11), dtype=jnp.float32)
    b = jax.random.normal(k4, (3, 5, 17, 11), dtype=jnp.float32)
    loss2 = loss_cont(a, b, min_pallas_bytes=0)
    jax.block_until_ready(loss2)
    ref2 = jnp.mean(jnp.abs(a - b))
    assert jnp.allclose(loss2, ref2, rtol=1e-5, atol=1e-6), (loss2, ref2)

    # Ragged last block: force a small row tile so rows % row_tile != 0 and the
    # gated in-kernel mask path runs.
    k5, k6 = jax.random.split(k2)
    c = jax.random.normal(k5, (24, 128), dtype=jnp.float32)
    d = jax.random.normal(k6, (24, 128), dtype=jnp.float32)
    loss3 = loss_cont(c, d, min_pallas_bytes=0, row_tile_override=16)
    jax.block_until_ready(loss3)
    ref3 = jnp.mean(jnp.abs(c - d))
    assert jnp.allclose(loss3, ref3, rtol=1e-5, atol=1e-6), (loss3, ref3)

    # Default small-input fallback path (plain XLA fusion).
    loss4 = loss_cont(imgs, gts)
    jax.block_until_ready(loss4)
    assert jnp.allclose(loss4, ref, rtol=1e-5, atol=1e-6), (loss4, ref)

    print("KERNEL_OK")
</pallas_src>

<mosaic_0001>
module attributes {stable_mosaic.version = 11 : i64} {
  func.func @_l1_kernel(%arg0: i32, %arg1: i32, %arg2: memref<16x128xf32, #tpu.memory_space<vmem>>, %arg3: memref<16x128xf32, #tpu.memory_space<vmem>>, %arg4: memref<1x8x128xf32, #tpu.memory_space<vmem>>) attributes {dimension_semantics = [#tpu.dimension_semantics<parallel>, #tpu.dimension_semantics<arbitrary>], iteration_bounds = array<i64: 1, 1>, scalar_prefetch = 0 : i64, scratch_operands = 0 : i64, tpu.core_type = #tpu.core_type<tc>, window_params = [{transform_indices = @transform_0, window_bounds = array<i64: 16, 128>}, {transform_indices = @transform_1, window_bounds = array<i64: 16, 128>}, {transform_indices = @transform_2, window_bounds = array<i64: 1, 8, 128>}]} {
    %c0_i32 = arith.constant 0 : i32
    %0 = arith.cmpi eq, %arg1, %c0_i32 : i32
    %1 = arith.extui %0 : i1 to i32
    %c0_i32_0 = arith.constant 0 : i32
    %2 = arith.cmpi ne, %1, %c0_i32_0 : i32
    scf.if %2 {
      %cst_10 = arith.constant 0.000000e+00 : f32
      %13 = vector.broadcast %cst_10 : f32 to vector<1x8x128xf32>
      %c0_11 = arith.constant 0 : index
      %c0_12 = arith.constant 0 : index
      %c0_13 = arith.constant 0 : index
      %14 = vector.load %arg4[%c0_11, %c0_12, %c0_13] : memref<1x8x128xf32, #tpu.memory_space<vmem>>, vector<1x8x128xf32>
      tpu.vector_store %arg4[%c0_11, %c0_12, %c0_13], %13 {strides = array<i32>} : memref<1x8x128xf32, #tpu.memory_space<vmem>>, vector<1x8x128xf32>,
    } else {
    }
    %c0 = arith.constant 0 : index
    %c0_1 = arith.constant 0 : index
    %3 = vector.load %arg2[%c0, %c0_1] : memref<16x128xf32, #tpu.memory_space<vmem>>, vector<16x128xf32>
    %c0_2 = arith.constant 0 : index
    %c0_3 = arith.constant 0 : index
    %4 = vector.load %arg3[%c0_2, %c0_3] : memref<16x128xf32, #tpu.memory_space<vmem>>, vector<16x128xf32>
    %5 = arith.subf %3, %4 : vector<16x128xf32>
    %6 = math.absf %5 : vector<16x128xf32>
    %7 = vector.shape_cast %6 : vector<16x128xf32> to vector<2x8x128xf32>
    %cst = arith.constant dense<0.000000e+00> : vector<8x128xf32>
    %8 = vector.multi_reduction <add>, %7, %cst [0] : vector<2x8x128xf32> to vector<8x128xf32>
    %c0_4 = arith.constant 0 : index
    %c0_5 = arith.constant 0 : index
    %c0_6 = arith.constant 0 : index
    %9 = vector.load %arg4[%c0_4, %c0_5, %c0_6] : memref<1x8x128xf32, #tpu.memory_space<vmem>>, vector<1x8x128xf32>
    %10 = vector.shape_cast %8 : vector<8x128xf32> to vector<1x8x128xf32>
    %11 = arith.addf %9, %10 : vector<1x8x128xf32>
    %c0_7 = arith.constant 0 : index
    %c0_8 = arith.constant 0 : index
    %c0_9 = arith.constant 0 : index
    %12 = vector.load %arg4[%c0_7, %c0_8, %c0_9] : memref<1x8x128xf32, #tpu.memory_space<vmem>>, vector<1x8x128xf32>
    tpu.vector_store %arg4[%c0_7, %c0_8, %c0_9], %11 {strides = array<i32>} : memref<1x8x128xf32, #tpu.memory_space<vmem>>, vector<1x8x128xf32>,
    return
  }
  func.func @transform_0(%arg0: i32, %arg1: i32) -> (i32, i32) {
    %c1_i32 = arith.constant 1 : i32
    %0 = arith.muli %arg0, %c1_i32 : i32
    %1 = arith.addi %0, %arg1 : i32
    %c0_i32 = arith.constant 0 : i32
    %c0_i32_0 = arith.constant 0 : i32
    return %1, %c0_i32 : i32, i32
  }
  func.func @transform_1(%arg0: i32, %arg1: i32) -> (i32, i32) {
    %c1_i32 = arith.constant 1 : i32
    %0 = arith.muli %arg0, %c1_i32 : i32
    %1 = arith.addi %0, %arg1 : i32
    %c0_i32 = arith.constant 0 : i32
    %c0_i32_0 = arith.constant 0 : i32
    return %1, %c0_i32 : i32, i32
  }
  func.func @transform_2(%arg0: i32, %arg1: i32) -> (i32, i32, i32) {
    %c0_i32 = arith.constant 0 : i32
    %c0_i32_0 = arith.constant 0 : i32
    %c0_i32_1 = arith.constant 0 : i32
    return %arg0, %c0_i32, %c0_i32_0 : i32, i32, i32
  }
}

</mosaic_0001>

<bundles_post_ra>
// kernel: tpu_custom_call.1
= control target key start
LH: loop header
LB: loop body
LE: loop exit
PB: predicated region body
PF: predicated region fallthrough
CT: control target
= control target key end

     0   :  { %7 = vsyncpa [#allocation3], 0  ;;  %s219_s0 = inlined_call_operand.hbm [shape: f32[16,128], index: 0, kind: input, shape index: {}]   ;;  %s220_s1 = inlined_call_operand.hbm [shape: f32[16,128], index: 1, kind: input, shape index: {}]   ;;  %s221_s2 = inlined_call_operand.hbm [shape: f32[1,8,128], index: 2, kind: output, shape index: {}]  }
   0x1   :  { %8 = vsyncpa [#allocation6], 0 }
   0x2   :  { %9 = vsyncpa [#allocation4], 0  ;;  %s163_s9 = smov [#allocation2]   ;;  %s91_s13 = scalar_lea.hbm %s219_s0, 256 }
   0x3   :  { %s19_s10 = sshll.u32 %s163_s9, 4  ;;  %p92_p0 = scmp.ne.s32.totalorder %s219_s0, %s91_s13  ;;  %s20_s10 = int_to_ptr.vmem [resolvable:$true] %s19_s10 }
   0x4   :  { %p95_p1 = scmp.lt.u32.totalorder %s91_s13, %s219_s0 }
   0x6   :  { %p97_p2 = pnand %p95_p1, %p92_p0 }
   0x8   :  { %100 = shalt.err (!%p97_p2)
}
   0x9   :  { %s101_s18 = scalar_lea.vmem %s20_s10, 256  ;;  %p106_p4 = scmp.lt.s32.totalorder %s20_s10, %s20_s10 }
   0xa   :  { %p102_p3 = scmp.ne.s32.totalorder %s20_s10, %s101_s18  ;;  %p107_p5 = scmp.lt.s32.totalorder %s101_s18, %s101_s18 }
   0xc   :  { %p108_p6 = por %p107_p5, %p106_p4 }
   0xe   :  { %p109_p7 = pnand %p108_p6, %p102_p3 }
  0x10   :  { %112 = shalt.err (!%p109_p7)
}
  0x11   :  { %s164_s19 = smov 128   ;;  %s165_s20 = smov 8  }
  0x12   :  { %25 = dma.hbm_to_vmem [thread:$0]  %s219_s0, 256, %s20_s10, [#allocation3], %s164_s19, %s164_s19, %s165_s20  }
  0x13   :  { %s166_s23 = smov [#allocation5]   ;;  %s113_s27 = scalar_lea.hbm %s220_s1, 256 }
  0x14   :  { %s35_s24 = sshll.u32 %s166_s23, 4  ;;  %p114_p8 = scmp.ne.s32.totalorder %s220_s1, %s113_s27  ;;  %s36_s24 = int_to_ptr.vmem [resolvable:$true] %s35_s24 }
  0x15   :  { %p117_p9 = scmp.lt.u32.totalorder %s113_s27, %s220_s1 }
  0x17   :  { %p119_p10 = pnand %p117_p9, %p114_p8 }
  0x19   :  { %122 = shalt.err (!%p119_p10)
}
  0x1a   :  { %s123_s4 = scalar_lea.vmem %s36_s24, 256  ;;  %p128_p12 = scmp.lt.s32.totalorder %s36_s24, %s36_s24 }
  0x1b   :  { %p124_p11 = scmp.ne.s32.totalorder %s36_s24, %s123_s4  ;;  %p129_p13 = scmp.lt.s32.totalorder %s123_s4, %s123_s4 }
  0x1d   :  { %p130_p0 = por %p129_p13, %p128_p12 }
  0x1f   :  { %p131_p1 = pnand %p130_p0, %p124_p11 }
  0x21   :  { %134 = shalt.err (!%p131_p1)
}
  0x22   :  { %41 = dma.hbm_to_vmem [thread:$0]  %s220_s1, 256, %s36_s24, [#allocation6], %s164_s19, %s164_s19, %s165_s20  }
  0x23   :  { %157 = dma.done.wait [#allocation3], 256  }
  0x24   :  { %158 = vsyncadd [#allocation3], 4294967040 }
  0x25   :  { %159 = dma.done.wait [#allocation6], 256  }
  0x26   :  { %160 = vsyncadd [#allocation6], 4294967040  ;;  %v57_v0 = vld [vmem:[#allocation2] sm:$0xff]  ;;  %v58_v1 = vld [vmem:[#allocation2 + $0x8] sm:$0xff]  ;;  %s167_s6 = smov [#allocation7]  }
  0x27   :  { %v59_v2 = vld [vmem:[#allocation5] sm:$0xff]  ;;  %v60_v3 = vld [vmem:[#allocation5 + $0x8] sm:$0xff]  ;;  %s75_s7 = sshll.u32 %s167_s6, 4  ;;  %s76_s7 = int_to_ptr.vmem [resolvable:$true] %s75_s7 }
  0x28   :  { %v61_v4 = vsub.f32 %v57_v0, %v59_v2  ;;  %v62_v5 = vsub.f32 %v58_v1, %v60_v3  ;;  %s135_s8 = scalar_lea.vmem %s76_s7, 128  ;;  %p140_p3 = scmp.lt.s32.totalorder %s76_s7, %s76_s7 }
  0x29   :  { %p136_p2 = scmp.ne.s32.totalorder %s76_s7, %s135_s8  ;;  %p141_p4 = scmp.lt.s32.totalorder %s135_s8, %s135_s8 }
  0x2a   :  { %v63_v6 = vand.u32 2147483647, %v61_v4  ;;  %v64_v7 = vand.u32 2147483647, %v62_v5 }
  0x2b   :  { %p142_p5 = por %p141_p4, %p140_p3 }
  0x2c   :  { %v65_v8 = vadd.f32 %v64_v7, %v63_v6 }
  0x2d   :  { %p143_p6 = pnand %p142_p5, %p136_p2 }
  0x2e   :  { %68 = vst [vmem:[#allocation7] sm:$0xff] %v65_v8 }
  0x2f   :  { %146 = shalt.err (!%p143_p6)
}
  0x30   :  { %s147_s10 = scalar_lea.hbm %s221_s2, 128 }
  0x31   :  { %p148_p7 = scmp.ne.s32.totalorder %s221_s2, %s147_s10  ;;  %p151_p8 = scmp.lt.u32.totalorder %s147_s10, %s221_s2 }
  0x33   :  { %p153_p9 = pnand %p151_p8, %p148_p7 }
  0x35   :  { %156 = shalt.err (!%p153_p9)
}
  0x36   :  { %78 = dma.vmem_to_hbm [thread:$0]  %s76_s7, 128, %s221_s2, [#allocation4]  }
  0x37   :  { %161 = dma.done.wait [#allocation4], 128  }
  0x38   :  { %162 = vsyncadd [#allocation4], 4294967168 }
  0x39   :  { %82 = vsyncpa [#allocation3], 1 }
  0x3a   :  { %83 = vsyncpa [#allocation6], 1 }
  0x3b   :  { %84 = vsyncpa [#allocation4], 1 }

</bundles_post_ra>
